<compile_context>
chip_gen: v6e
topology: v6e:2x2x1
jax: 0.10.0
libtpu: 0.0.40
codegen_flags: <defaults>
</compile_context>

<pallas_src>
import functools

import jax
import jax.numpy as jnp
from jax import lax
from jax.experimental import pallas as pl
from jax.experimental.pallas import tpu as pltpu


def _round_up(x: int, m: int) -> int:
    return (x + m - 1) // m * m


def _clip_topk_kernel(img_ref, txt_ref, out_ref, rank_ref, diag_ref, *,
                      k: int, tile: int, n_tiles: int):
    i = pl.program_id(0)                 # row tile index
    j = pl.program_id(1)                 # rotated column step (j==0 -> diag block)
    col_block = (i + j) % n_tiles        # actual column-tile index

    # Single MXU matmul per step; no per-step normalization work remains.
    # Contract on dim 1 of both operands — no explicit transpose of txt.
    sim = lax.dot_general(img_ref[...], txt_ref[...],
                          dimension_numbers=(((1,), (1,)), ((), ())),
                          preferred_element_type=jnp.float32)   # (tile, tile)

    @pl.when(j == 0)
    def _():
        # Diagonal block (col_block == i): pull the diagonal out of the same
        # MXU output the comparisons use (exact-equality tie-break stays
        # consistent) and initialize the rank accumulator.  This is the only
        # step that materializes (tile, tile) iotas.
        row_l = lax.broadcasted_iota(jnp.int32, (tile, tile), 0)
        col_l = lax.broadcasted_iota(jnp.int32, (tile, tile), 1)
        diag = jnp.sum(jnp.where(row_l == col_l, sim, 0.0),
                       axis=1, keepdims=True)                     # (tile, 1)
        diag_ref[...] = diag
        gt = (sim > diag).astype(jnp.float32)
        eq = (sim == diag).astype(jnp.float32)
        lower = (col_l < row_l).astype(jnp.float32)   # local == global tie-break here
        rank_ref[...] = jnp.sum(gt + lower * eq, axis=1, keepdims=True)

    @pl.when(j != 0)
    def _():
        # Off-diagonal block: global column and row index ranges are disjoint,
        # so torch.topk's lower-index-first tie-break collapses to the scalar
        # (col_block < i).  No (tile, tile) iotas, no per-element index math.
        diag = diag_ref[...]
        gt = (sim > diag).astype(jnp.float32)
        eq = (sim == diag).astype(jnp.float32)
        tie_w = jnp.where(col_block < i, jnp.float32(1.0), jnp.float32(0.0))
        # TODO(synk): if a bundle profile shows the XLU row-reduce binding,
        # replace this jnp.sum with an MXU reduce (dot against (tile,1) ones).
        rank_ref[...] += jnp.sum(gt + tie_w * eq, axis=1, keepdims=True)

    @pl.when(j == n_tiles - 1)
    def _():
        # rank holds exact small integers in f32; row correct iff rank < k.
        out_ref[...] = (rank_ref[...] < k).astype(jnp.float32)


def clip_topk_accuracy(img_embed: jax.Array, text_embed: jax.Array, k: int,
                       *, tile: int = 512,
                       compute_dtype=jnp.bfloat16) -> jax.Array:
    """Pallas implementation of CLIPTopKAccuracy.forward. Returns a jnp scalar.

    compute_dtype controls the MXU operand dtype (default bf16 for v6e/v7x
    throughput and halved HBM streaming).  Pass jnp.float32 for bit-exact
    parity with the f32 PyTorch module when near-ties matter.
    """
    assert img_embed.ndim == 2 and img_embed.shape == text_embed.shape
    b, d = img_embed.shape
    k = int(k)

    # Per-generation VMEM cap: 0.75 * physical -> ~48 MiB on v7x (64 MiB/TC),
    # ~96 MiB on v5e/v6e (128 MiB).
    try:
        phys_vmem = int(pltpu.get_tpu_info().vmem_capacity_bytes)
    except Exception:
        phys_vmem = 64 << 20
    vmem_cap = (phys_vmem * 3) // 4

    b8 = _round_up(b, 8)
    tile = max(8, (min(int(tile), b8) // 8) * 8)
    # v7x megacore: give the "parallel" row-tile axis >= 2 tiles when possible
    # so both TensorCores get work (no effect on 1-TC v5e/v6e).
    if tile == b8 and b8 >= 16:
        tile = _round_up(b8 // 2, 8)

    in_bytes = jnp.dtype(compute_dtype).itemsize

    def _vmem_estimate(t):
        # double-buffered img + text tiles, (t, t) f32 MXU block plus
        # compare/select temporaries, and headroom.
        return 2 * 2 * t * d * in_bytes + 6 * t * t * 4 + (1 << 20)

    # Shrink tile if the working set would not fit the per-chip VMEM budget.
    while tile > 64 and _vmem_estimate(tile) > vmem_cap:
        tile = max(64, ((tile // 2) // 8) * 8)

    b_pad = _round_up(b, tile)
    n_tiles = b_pad // tile

    img_f = img_embed.astype(jnp.float32)
    txt_f = text_embed.astype(jnp.float32)
    if b_pad != b:
        pad = ((0, b_pad - b), (0, 0))
        img_f = jnp.pad(img_f, pad)
        txt_f = jnp.pad(txt_f, pad)

    # Hoisted normalization (once, f32, AFTER padding):
    #   * img normalization dropped: row-wise ranking is invariant to the
    #     positive per-row img scale.
    #   * padded text rows: rsqrt(0)=inf -> 0*inf=NaN -> their similarity
    #     columns are NaN and never outrank (NaN comparisons are false);
    #     padded rows are masked out of the mean below.
    # TODO(synk): no eps, matching the PyTorch module — all-zero embedding rows
    # produce NaN/degenerate similarities just like the original.
    inv_txt = lax.rsqrt(jnp.sum(txt_f * txt_f, axis=1, keepdims=True))
    txt_n = (txt_f * inv_txt).astype(compute_dtype)
    img_c = img_f.astype(compute_dtype)

    vmem_limit = int(min(max(_vmem_estimate(tile), 16 << 20), vmem_cap))

    out = pl.pallas_call(
        functools.partial(_clip_topk_kernel, k=k, tile=tile, n_tiles=n_tiles),
        out_shape=jax.ShapeDtypeStruct((b_pad, 1), jnp.float32),
        grid_spec=pltpu.PrefetchScalarGridSpec(
            num_scalar_prefetch=0,
            grid=(n_tiles, n_tiles),
            in_specs=[
                # img tile is resident across j (block index constant in j).
                pl.BlockSpec((tile, d), lambda i, j: (i, 0)),
                # text tile streams in rotated (diagonal-first) order.
                # TODO(synk): add pipeline_mode=pl.Buffered(3) here if a
                # profile shows exposed text-tile DMA at large tile / small D.
                pl.BlockSpec((tile, d), lambda i, j: ((i + j) % n_tiles, 0)),
            ],
            out_specs=pl.BlockSpec((tile, 1), lambda i, j: (i, 0)),
            scratch_shapes=[
                pltpu.VMEM((tile, 1), jnp.float32),  # per-row outrank count
                pltpu.VMEM((tile, 1), jnp.float32),  # per-row diagonal value
            ],
        ),
        compiler_params=pltpu.CompilerParams(
            dimension_semantics=("parallel", "arbitrary"),
            vmem_limit_bytes=vmem_limit,
        ),
    )(img_c, txt_n)

    corr = out[:b, 0]                    # drop padded rows
    return jnp.sum(corr) / jnp.float32(b)


def _reference(img_embed, text_embed, k):
    """Pure-JAX reference mirroring the PyTorch module."""
    img_n = img_embed / jnp.linalg.norm(img_embed, axis=1, keepdims=True)
    txt_n = text_embed / jnp.linalg.norm(text_embed, axis=1, keepdims=True)
    mat = img_n @ txt_n.T
    topk = lax.top_k(mat, k)[1]
    gt = jnp.arange(mat.shape[0])[:, None]
    corr = (topk == gt).sum(axis=1).astype(jnp.float32)
    return float(corr.mean())


if __name__ == "__main__":
    # Case 1: module-sized toy shapes, exact f32 path (single row tile).
    b1, d1, k1 = 8, 32, 3
    k_a, k_b = jax.random.split(jax.random.PRNGKey(0))
    img1 = jax.random.normal(k_a, (b1, d1), dtype=jnp.float32)
    txt1 = jax.random.normal(k_b, (b1, d1), dtype=jnp.float32)
    acc1 = jax.block_until_ready(
        clip_topk_accuracy(img1, txt1, k1, compute_dtype=jnp.float32))
    ref1 = _reference(img1, txt1, k1)
    assert abs(float(acc1) - ref1) < 1e-6, (float(acc1), ref1)

    # Case 2: multi-tile grid + row padding + rotated column order, exact f32.
    b2, d2, k2, t2 = 90, 64, 5, 32
    k_c, k_d = jax.random.split(jax.random.PRNGKey(1))
    img2 = jax.random.normal(k_c, (b2, d2), dtype=jnp.float32)
    txt2 = jax.random.normal(k_d, (b2, d2), dtype=jnp.float32)
    acc2 = jax.block_until_ready(
        clip_topk_accuracy(img2, txt2, k2, tile=t2, compute_dtype=jnp.float32))
    ref2 = _reference(img2, txt2, k2)
    assert abs(float(acc2) - ref2) < 1e-6, (float(acc2), ref2)

    # Case 3: default fast path (bf16 matmul, auto tile selection / halving).
    # bf16 can flip a near-tie at the top-k boundary, so allow up to two
    # flipped samples vs the f32 reference.
    acc3 = jax.block_until_ready(clip_topk_accuracy(img2, txt2, k2))
    assert abs(float(acc3) - ref2) <= 2.0 / b2 + 1e-6, (float(acc3), ref2)

    print("KERNEL_OK")
</pallas_src>

<mosaic_0001>
module attributes {stable_mosaic.version = 11 : i64} {
  func.func @_clip_topk_kernel(%arg0: i32, %arg1: i32, %arg2: memref<8x32xf32, #tpu.memory_space<vmem>>, %arg3: memref<8x32xf32, #tpu.memory_space<vmem>>, %arg4: memref<8x1xf32, #tpu.memory_space<vmem>>, %arg5: memref<8x1xf32, #tpu.memory_space<vmem>>, %arg6: memref<8x1xf32, #tpu.memory_space<vmem>>) attributes {dimension_semantics = [#tpu.dimension_semantics<parallel>, #tpu.dimension_semantics<arbitrary>], iteration_bounds = array<i64: 1, 1>, scalar_prefetch = 0 : i64, scratch_operands = 2 : i64, tpu.core_type = #tpu.core_type<tc>, window_params = [{transform_indices = @transform_0, window_bounds = array<i64: 8, 32>}, {transform_indices = @transform_1, window_bounds = array<i64: 8, 32>}, {transform_indices = @transform_2, window_bounds = array<i64: 8, 1>}]} {
    %0 = arith.addi %arg0, %arg1 : i32
    %c1_i32 = arith.constant 1 : i32
    %c0_i32 = arith.constant 0 : i32
    %1 = arith.cmpi eq, %c1_i32, %c0_i32 : i32
    %c1_i32_0 = arith.constant 1 : i32
    %2 = arith.select %1, %c1_i32_0, %c1_i32 : i32
    %3 = arith.remsi %0, %2 : i32
    %c0_i32_1 = arith.constant 0 : i32
    %4 = arith.cmpi ne, %3, %c0_i32_1 : i32
    %c0_i32_2 = arith.constant 0 : i32
    %5 = arith.cmpi slt, %3, %c0_i32_2 : i32
    %c0_i32_3 = arith.constant 0 : i32
    %6 = arith.cmpi slt, %2, %c0_i32_3 : i32
    %7 = arith.xori %5, %6 : i1
    %8 = arith.andi %7, %4 : i1
    %9 = arith.addi %3, %2 : i32
    %10 = arith.select %8, %9, %3 : i32
    %c0 = arith.constant 0 : index
    %c0_4 = arith.constant 0 : index
    %11 = vector.load %arg2[%c0, %c0_4] : memref<8x32xf32, #tpu.memory_space<vmem>>, vector<8x32xf32>
    %c0_5 = arith.constant 0 : index
    %c0_6 = arith.constant 0 : index
    %12 = vector.load %arg3[%c0_5, %c0_6] : memref<8x32xf32, #tpu.memory_space<vmem>>, vector<8x32xf32>
    %cst = arith.constant dense<0.000000e+00> : vector<8x8xf32>
    %13 = tpu.matmul %11, %12, %cst {dimension_numbers = #tpu.dot_dimension_numbers<[1], [1], [0], [0], [0, 0, 1, 0], [], []>} : vector<8x32xf32>, vector<8x32xf32>, vector<8x8xf32> -> vector<8x8xf32>
    %c0_i32_7 = arith.constant 0 : i32
    %14 = arith.cmpi eq, %arg1, %c0_i32_7 : i32
    %15 = arith.extui %14 : i1 to i32
    %c0_i32_8 = arith.constant 0 : i32
    %16 = arith.cmpi ne, %15, %c0_i32_8 : i32
    scf.if %16 {
      %23 = tpu.iota {dimensions = array<i32: 0>} : vector<8x8xi32>
      %24 = tpu.iota {dimensions = array<i32: 1>} : vector<8x8xi32>
      %25 = arith.cmpi eq, %23, %24 : vector<8x8xi32>
      %cst_13 = arith.constant 0.000000e+00 : f32
      %26 = vector.broadcast %cst_13 : f32 to vector<8x8xf32>
      %27 = arith.select %25, %13, %26 : vector<8x8xi1>, vector<8x8xf32>
      %cst_14 = arith.constant dense<0.000000e+00> : vector<8xf32>
      %28 = vector.multi_reduction <add>, %27, %cst_14 [1] : vector<8x8xf32> to vector<8xf32>
      %29 = vector.shape_cast %28 : vector<8xf32> to vector<8x1xf32>
      %c0_15 = arith.constant 0 : index
      %c0_16 = arith.constant 0 : index
      %30 = vector.load %arg6[%c0_15, %c0_16] : memref<8x1xf32, #tpu.memory_space<vmem>>, vector<8x1xf32>
      tpu.vector_store %arg6[%c0_15, %c0_16], %29 {strides = array<i32>} : memref<8x1xf32, #tpu.memory_space<vmem>>, vector<8x1xf32>,
      %31 = vector.broadcast %29 : vector<8x1xf32> to vector<8x8xf32>
      %32 = arith.cmpf ogt, %13, %31 : vector<8x8xf32>
      %33 = arith.extui %32 : vector<8x8xi1> to vector<8x8xi32>
      %34 = arith.sitofp %33 : vector<8x8xi32> to vector<8x8xf32>
      %35 = vector.broadcast %29 : vector<8x1xf32> to vector<8x8xf32>
      %36 = arith.cmpf oeq, %13, %35 : vector<8x8xf32>
      %37 = arith.extui %36 : vector<8x8xi1> to vector<8x8xi32>
      %38 = arith.sitofp %37 : vector<8x8xi32> to vector<8x8xf32>
      %39 = arith.cmpi slt, %24, %23 : vector<8x8xi32>
      %40 = arith.extui %39 : vector<8x8xi1> to vector<8x8xi32>
      %41 = arith.sitofp %40 : vector<8x8xi32> to vector<8x8xf32>
      %42 = arith.mulf %41, %38 : vector<8x8xf32>
      %43 = arith.addf %34, %42 : vector<8x8xf32>
      %cst_17 = arith.constant dense<0.000000e+00> : vector<8xf32>
      %44 = vector.multi_reduction <add>, %43, %cst_17 [1] : vector<8x8xf32> to vector<8xf32>
      %45 = vector.shape_cast %44 : vector<8xf32> to vector<8x1xf32>
      %c0_18 = arith.constant 0 : index
      %c0_19 = arith.constant 0 : index
      %46 = vector.load %arg5[%c0_18, %c0_19] : memref<8x1xf32, #tpu.memory_space<vmem>>, vector<8x1xf32>
      tpu.vector_store %arg5[%c0_18, %c0_19], %45 {strides = array<i32>} : memref<8x1xf32, #tpu.memory_space<vmem>>, vector<8x1xf32>,
    } else {
    }
    %c0_i32_9 = arith.constant 0 : i32
    %17 = arith.cmpi ne, %arg1, %c0_i32_9 : i32
    %18 = arith.extui %17 : i1 to i32
    %c0_i32_10 = arith.constant 0 : i32
    %19 = arith.cmpi ne, %18, %c0_i32_10 : i32
    scf.if %19 {
      %c0_13 = arith.constant 0 : index
      %c0_14 = arith.constant 0 : index
      %23 = vector.load %arg6[%c0_13, %c0_14] : memref<8x1xf32, #tpu.memory_space<vmem>>, vector<8x1xf32>
      %24 = vector.broadcast %23 : vector<8x1xf32> to vector<8x8xf32>
      %25 = arith.cmpf ogt, %13, %24 : vector<8x8xf32>
      %26 = arith.extui %25 : vector<8x8xi1> to vector<8x8xi32>
      %27 = arith.sitofp %26 : vector<8x8xi32> to vector<8x8xf32>
      %28 = vector.broadcast %23 : vector<8x1xf32> to vector<8x8xf32>
      %29 = arith.cmpf oeq, %13, %28 : vector<8x8xf32>
      %30 = arith.extui %29 : vector<8x8xi1> to vector<8x8xi32>
      %31 = arith.sitofp %30 : vector<8x8xi32> to vector<8x8xf32>
      %32 = arith.cmpi slt, %10, %arg0 : i32
      %cst_15 = arith.constant 1.000000e+00 : f32
      %cst_16 = arith.constant 0.000000e+00 : f32
      %33 = arith.select %32, %cst_15, %cst_16 : f32
      %c0_17 = arith.constant 0 : index
      %c0_18 = arith.constant 0 : index
      %34 = vector.load %arg5[%c0_17, %c0_18] : memref<8x1xf32, #tpu.memory_space<vmem>>, vector<8x1xf32>
      %35 = vector.broadcast %33 : f32 to vector<8x8xf32>
      %36 = arith.mulf %35, %31 : vector<8x8xf32>
      %37 = arith.addf %27, %36 : vector<8x8xf32>
      %cst_19 = arith.constant dense<0.000000e+00> : vector<8xf32>
      %38 = vector.multi_reduction <add>, %37, %cst_19 [1] : vector<8x8xf32> to vector<8xf32>
      %39 = vector.shape_cast %38 : vector<8xf32> to vector<8x1xf32>
      %40 = arith.addf %34, %39 : vector<8x1xf32>
      %c0_20 = arith.constant 0 : index
      %c0_21 = arith.constant 0 : index
      %41 = vector.load %arg5[%c0_20, %c0_21] : memref<8x1xf32, #tpu.memory_space<vmem>>, vector<8x1xf32>
      tpu.vector_store %arg5[%c0_20, %c0_21], %40 {strides = array<i32>} : memref<8x1xf32, #tpu.memory_space<vmem>>, vector<8x1xf32>,
    } else {
    }
    %c0_i32_11 = arith.constant 0 : i32
    %20 = arith.cmpi eq, %arg1, %c0_i32_11 : i32
    %21 = arith.extui %20 : i1 to i32
    %c0_i32_12 = arith.constant 0 : i32
    %22 = arith.cmpi ne, %21, %c0_i32_12 : i32
    scf.if %22 {
      %c0_13 = arith.constant 0 : index
      %c0_14 = arith.constant 0 : index
      %23 = vector.load %arg5[%c0_13, %c0_14] : memref<8x1xf32, #tpu.memory_space<vmem>>, vector<8x1xf32>
      %cst_15 = arith.constant 3.000000e+00 : f32
      %24 = vector.broadcast %cst_15 : f32 to vector<8x1xf32>
      %25 = arith.cmpf olt, %23, %24 : vector<8x1xf32>
      %26 = arith.extui %25 : vector<8x1xi1> to vector<8x1xi32>
      %27 = arith.sitofp %26 : vector<8x1xi32> to vector<8x1xf32>
      %c0_16 = arith.constant 0 : index
      %c0_17 = arith.constant 0 : index
      %28 = vector.load %arg4[%c0_16, %c0_17] : memref<8x1xf32, #tpu.memory_space<vmem>>, vector<8x1xf32>
      tpu.vector_store %arg4[%c0_16, %c0_17], %27 {strides = array<i32>} : memref<8x1xf32, #tpu.memory_space<vmem>>, vector<8x1xf32>,
    } else {
    }
    return
  }
  func.func @transform_0(%arg0: i32, %arg1: i32) -> (i32, i32) {
    %c0_i32 = arith.constant 0 : i32
    %c0_i32_0 = arith.constant 0 : i32
    return %arg0, %c0_i32 : i32, i32
  }
  func.func @transform_1(%arg0: i32, %arg1: i32) -> (i32, i32) {
    %0 = arith.addi %arg0, %arg1 : i32
    %c1_i32 = arith.constant 1 : i32
    %c0_i32 = arith.constant 0 : i32
    %1 = arith.cmpi eq, %c1_i32, %c0_i32 : i32
    %c1_i32_0 = arith.constant 1 : i32
    %2 = arith.select %1, %c1_i32_0, %c1_i32 : i32
    %3 = arith.remsi %0, %2 : i32
    %c0_i32_1 = arith.constant 0 : i32
    %4 = arith.cmpi ne, %3, %c0_i32_1 : i32
    %c0_i32_2 = arith.constant 0 : i32
    %5 = arith.cmpi slt, %3, %c0_i32_2 : i32
    %c0_i32_3 = arith.constant 0 : i32
    %6 = arith.cmpi slt, %2, %c0_i32_3 : i32
    %7 = arith.xori %5, %6 : i1
    %8 = arith.andi %7, %4 : i1
    %9 = arith.addi %3, %2 : i32
    %10 = arith.select %8, %9, %3 : i32
    %c0_i32_4 = arith.constant 0 : i32
    %c0_i32_5 = arith.constant 0 : i32
    return %10, %c0_i32_4 : i32, i32
  }
  func.func @transform_2(%arg0: i32, %arg1: i32) -> (i32, i32) {
    %c0_i32 = arith.constant 0 : i32
    %c0_i32_0 = arith.constant 0 : i32
    return %arg0, %c0_i32 : i32, i32
  }
}

</mosaic_0001>

<bundles_post_ra>
// kernel: tpu_custom_call.1
= control target key start
LH: loop header
LB: loop body
LE: loop exit
PB: predicated region body
PF: predicated region fallthrough
CT: control target
= control target key end

     0   :  { %7 = vsyncpa [#allocation5], 0  ;;  %s282_s0 = inlined_call_operand.hbm [shape: f32[8,32], index: 0, kind: input, shape index: {}]   ;;  %s283_s1 = inlined_call_operand.hbm [shape: f32[8,32], index: 1, kind: input, shape index: {}]   ;;  %s284_s2 = inlined_call_operand.vmem [shape: f32[8,1], index: 2, kind: output, shape index: {}]  }
   0x1   :  { %8 = vsyncpa [#allocation7], 0  ;;  %s252_s9 = smov [#allocation4]   ;;  %s253_s11 = smov [#allocation6]  }
   0x2   :  { %s15_s10 = sshll.u32 %s252_s9, 4  ;;  %s25_s12 = sshll.u32 %s253_s11, 4  ;;  %s16_s10 = int_to_ptr.vmem [resolvable:$true] %s15_s10  ;;  %s26_s12 = int_to_ptr.vmem [resolvable:$true] %s25_s12 }
   0x3   :  { %s216_s13 = scalar_lea.vmem %s16_s10, 128  ;;  %p221_p1 = scmp.lt.s32.totalorder %s16_s10, %s16_s10 }
   0x4   :  { %p217_p0 = scmp.ne.s32.totalorder %s16_s10, %s216_s13  ;;  %p222_p2 = scmp.lt.s32.totalorder %s216_s13, %s216_s13 }
   0x6   :  { %p223_p3 = por %p222_p2, %p221_p1 }
   0x8   :  { %p224_p4 = pnand %p223_p3, %p217_p0 }
   0xa   :  { %227 = shalt.err (!%p224_p4)
}
   0xb   :  { %18 = dma.hbm_to_vmem [thread:$0]  %s282_s0, 128, %s16_s10, [#allocation5]  }
   0xc   :  { %s236_s16 = scalar_lea.vmem %s26_s12, 128  ;;  %p241_p6 = scmp.lt.s32.totalorder %s26_s12, %s26_s12 }
   0xd   :  { %p237_p5 = scmp.ne.s32.totalorder %s26_s12, %s236_s16  ;;  %p242_p7 = scmp.lt.s32.totalorder %s236_s16, %s236_s16 }
   0xf   :  { %p243_p8 = por %p242_p7, %p241_p6 }
  0x11   :  { %p244_p9 = pnand %p243_p8, %p237_p5 }
  0x13   :  { %247 = shalt.err (!%p244_p9)
}
  0x14   :  { %28 = dma.hbm_to_vmem [thread:$0]  %s283_s1, 128, %s26_s12, [#allocation7]  }
  0x15   :  { %248 = dma.done.wait [#allocation5], 128  }
  0x16   :  { %249 = vsyncadd [#allocation5], 4294967168 }
  0x17   :  { %250 = dma.done.wait [#allocation7], 128  }
  0x18   :  { %251 = vsyncadd [#allocation7], 4294967168  ;;  %v254_v0 = vmov 0.0   ;;  %vm255_vm0 = vmmov 0   ;;  %vm37_vm1 = vcmask 261120   ;;  %v36_v1 = vld [vmem:[#allocation6] sm:$0xff]  ;;  %v118_v3 = vlaneseq }
  0x19   :  { %199 = vmatprep.subr.mxu0 %v254_v0  ;;  %201 = vmatprep.mubr.msk.f32.mxu0 %vm255_vm0, %v254_v0  ;;  %v35_v2 = vld [vmem:[#allocation4] sm:$0xff]  ;;  %vm124_vm4 = vcmask 64512   ;;  %vm128_vm5 = vcmask 7168  }
  0x1a   :  { %200 = vmatpush3.xpose.msk.msra.mxu0 %vm37_vm1, %v36_v1  ;;  %v119_v4 = vshrl.u32 %v118_v3, 7  ;;  %v121_v5 = vand.u32 127, %v118_v3 }
  0x1c   :  { %vm136_vm2 = vcmp.lt.s32.totalorder %v121_v5, %v119_v4  ;;  %vm122_vm3 = vcmp.eq.s32.totalorder %v119_v4, %v121_v5 }
  0x1d   :  { %202 = vmatmul.mubr.msk.f32.vlgmr.msra.gmra.mxu0 %vm37_vm1, %v35_v2  ;;  %v193_v11 = vsel %vm136_vm2, 1.0, %v254_v0 }
  0xdd   :  { %v110_v6 = vpop.f32.mrf.mxu0 }
  0xde   :  { %v123_v7 = vsel %vm122_vm3, %v110_v6, 0.0 }
  0xdf   :  { %v203_v8 = vpop.f32.mrf.mxu0  ;;  %v125_v9 = vsel %vm124_vm4, %v123_v7, 0.0 }
  0xe0   :  { %126 = vadd.xlane.f32.xlu0 %v125_v9 }
 0x169   :  { %v127_v10 = vpop.xlane.xlu0 %126 }
 0x16a   :  { %vm130_vm6 = vcmp.gt.f32.partialorder %v110_v6, %v127_v10  ;;  %vm133_vm7 = vcmp.eq.f32.partialorder %v110_v6, %v127_v10 }
 0x16b   :  { %v192_v12 = vsel %vm133_vm7, 1.0, %v254_v0  ;;  %v191_v14 = vsel %vm130_vm6, 1.0, %v254_v0 }
 0x16c   :  { %v139_v13 = vmul.f32 %v193_v11, %v192_v12 }
 0x16e   :  { %v140_v15 = vadd.f32 %v191_v14, %v139_v13 }
 0x170   :  { %v141_v16 = vsel %vm124_vm4, %v140_v15, 0.0 }
 0x171   :  { %142 = vadd.xlane.f32.xlu0 %v141_v16 }
 0x1fa   :  { %v143_v17 = vpop.xlane.xlu0 %142 }
 0x1fb   :  { %144 = vst.msk [vmem:[#allocation2] sm:$0xff] %vm128_vm5, %v143_v17 }
 0x202   :  { %v177_v18 = vld [vmem:[#allocation2] sm:$0xff] }
 0x203   :  { %vm178_vm8 = vcmp.lt.f32.partialorder %v177_v18, 3.0 }
 0x204   :  { %v196_v19 = vsel %vm178_vm8, 1.0, %v254_v0 }
 0x205   :  { %182 = vst.msk [vmem:[%s284_s2] sm:$0xff] %vm128_vm5, %v196_v19 }
 0x206   :  { %187 = vsyncpa [#allocation5], 1 }
 0x207   :  { %188 = vsyncpa [#allocation7], 1 }

</bundles_post_ra>
